<compile_context>
chip_gen: v7x
topology: tpu7x:2x2x1
jax: 0.10.0
libtpu: 0.0.40
codegen_flags: <defaults>
</compile_context>

<pallas_src>
import functools

import jax
import jax.numpy as jnp
from jax import lax
from jax.experimental import pallas as pl
from jax.experimental.pallas import tpu as pltpu


def _round_up(x, m):
    return ((x + m - 1) // m) * m


# ------------------------------- fused kernel ------------------------------ #

def _igcv3_block_kernel(x_ref, w1t_ref, kdwt_ref, b2_ref, w3t_ref, b3_ref,
                        o_ref, hid_ref, *, tap_offsets, r_slab, cin,
                        res_offset, use_res, mxu_dtype):
    """One IGCV3 InvertedResidual block for one image, channel-major layout.

    x_ref   : [1, cin_p, r_tot]  padded image; flattened spatial on lanes.
              Channel `cin` is the 0/1 interior mask, so the expand matmul
              also applies the BN1-folded bias and produces exact zeros at
              every padding position.
    hid_ref : [chid, r_tot]      VMEM scratch for the expanded activation
                                 (never written back to HBM).
    o_ref   : [1, oup, r_slab]   lane-dense output slab (final channel order).
    """
    # ---- grouped 1x1 expand + BN1 (bias via mask channel): one matmul -----
    xa = x_ref[0].astype(mxu_dtype)                       # [cin_p, r_tot]
    hid_ref[...] = jnp.dot(w1t_ref[...], xa,
                           preferred_element_type=jnp.float32)

    # ---- depthwise 3x3 (+BN2 scale folded into taps): 9 slab FMAs ----------
    kdwt = kdwt_ref[...]                                  # [chid, 9] f32
    acc = None
    for t, off in enumerate(tap_offsets):                 # static Python unroll
        term = hid_ref[:, off:off + r_slab] * kdwt[:, t:t + 1]
        acc = term if acc is None else acc + term
    z = jnp.clip(acc + b2_ref[...], 0.0, 6.0)             # BN2 bias + ReLU6

    # ---- grouped 1x1 projection + BN3: one matmul, one lane-dense store ----
    out = jnp.dot(w3t_ref[...], z.astype(mxu_dtype),
                  preferred_element_type=jnp.float32) + b3_ref[...]
    if use_res:
        # shuffles/BN are folded into the weights -> residual adds raw x.
        out = out + x_ref[0, 0:cin, res_offset:res_offset + r_slab]
    o_ref[0] = out.astype(o_ref.dtype)


def _call_block(x2d, w1t, kdwt, b2col, w3t, b3col, *, oup, r_slab, tap_offsets,
                cin, res_offset, use_res, mxu_dtype):
    n, cin_p, r_tot = x2d.shape
    chid = w1t.shape[0]
    kern = functools.partial(
        _igcv3_block_kernel, tap_offsets=tuple(tap_offsets), r_slab=r_slab,
        cin=cin, res_offset=res_offset, use_res=use_res, mxu_dtype=mxu_dtype)
    return pl.pallas_call(
        kern,
        out_shape=jax.ShapeDtypeStruct((n, oup, r_slab), jnp.float32),
        grid=(n,),
        in_specs=[
            pl.BlockSpec((1, cin_p, r_tot), lambda i: (i, 0, 0)),
            pl.BlockSpec(w1t.shape, lambda i: (0, 0)),
            pl.BlockSpec(kdwt.shape, lambda i: (0, 0)),
            pl.BlockSpec(b2col.shape, lambda i: (0, 0)),
            pl.BlockSpec(w3t.shape, lambda i: (0, 0)),
            pl.BlockSpec(b3col.shape, lambda i: (0, 0)),
        ],
        out_specs=pl.BlockSpec((1, oup, r_slab), lambda i: (i, 0, 0)),
        scratch_shapes=[pltpu.VMEM((chid, r_tot), jnp.float32)],
        compiler_params=pltpu.CompilerParams(
            dimension_semantics=("parallel",)),
    )(x2d, w1t, kdwt, b2col, w3t, b3col)


# ------------------------------ module wrapper ----------------------------- #

def _shuffle_perm(c, groups):
    # PermutationBlock: out[:, j] = in[:, (j % G) * (c // G) + j // G]
    g = groups
    return jnp.array([(j % g) * (c // g) + j // g for j in range(c)],
                     dtype=jnp.int32)


class InvertedResidualPallas:
    def __init__(self, inp, oup, stride, expand_ratio, key,
                 mxu_dtype=jnp.bfloat16):
        assert stride in (1, 2)
        assert inp % 2 == 0 and oup % 2 == 0
        hidden = inp * expand_ratio
        assert hidden % 2 == 0
        self.inp, self.oup, self.stride, self.hidden = inp, oup, stride, hidden
        self.use_res_connect = (stride == 1 and inp == oup)
        self.mxu_dtype = mxu_dtype
        eps = 1e-5
        ks = jax.random.split(key, 16)

        def bn(kg, kb, km, kv, c):
            gamma = 0.5 + jax.random.uniform(kg, (c,), jnp.float32)
            beta = 0.1 * jax.random.normal(kb, (c,), jnp.float32)
            mean = 0.1 * jax.random.normal(km, (c,), jnp.float32)
            var = 0.5 + jax.random.uniform(kv, (c,), jnp.float32)
            scale = gamma / jnp.sqrt(var + eps)
            return scale, beta - mean * scale

        # raw parameters (same layout as the PyTorch module)
        self.w1 = 0.1 * jax.random.normal(ks[0], (hidden, inp // 2, 1, 1),
                                          jnp.float32)
        self.scale1, self.bias1 = bn(ks[1], ks[2], ks[3], ks[4], hidden)
        self.wd = 0.1 * jax.random.normal(ks[5], (hidden, 1, 3, 3), jnp.float32)
        self.scale2, self.bias2 = bn(ks[6], ks[7], ks[8], ks[9], hidden)
        self.w3 = 0.1 * jax.random.normal(ks[10], (oup, hidden // 2, 1, 1),
                                          jnp.float32)
        self.scale3, self.bias3 = bn(ks[11], ks[12], ks[13], ks[14], oup)

        self.perm1 = _shuffle_perm(hidden, 2)
        self.perm2 = _shuffle_perm(oup, int(round(oup / 2)))

        # ---- fold groups / BN scales / channel shuffles into the weights ----
        i2, h2, o2 = inp // 2, hidden // 2, oup // 2
        w1sq = self.w1[:, :, 0, 0]                        # [hidden, inp//2]
        w1bd = jnp.zeros((inp, hidden), jnp.float32)      # block-diag (groups=2)
        w1bd = w1bd.at[:i2, :h2].set(w1sq[:h2].T)
        w1bd = w1bd.at[i2:, h2:].set(w1sq[h2:].T)
        w1_eff = (w1bd * self.scale1[None, :])[:, self.perm1]   # [inp, hidden]
        b1_eff = self.bias1[self.perm1]                         # [hidden]

        w3sq = self.w3[:, :, 0, 0]                        # [oup, hidden//2]
        w3bd = jnp.zeros((hidden, oup), jnp.float32)
        w3bd = w3bd.at[:h2, :o2].set(w3sq[:o2].T)
        w3bd = w3bd.at[h2:, o2:].set(w3sq[o2:].T)
        w3_eff = (w3bd * self.scale3[None, :])[:, self.perm2]   # [hidden, oup]
        b3_eff = self.bias3[self.perm2]                         # [oup]

        # ---- channel-major kernel operands ----
        # augmented input channels: [x(0..inp-1), interior-mask, zero padding]
        self.cin_p = _round_up(inp + 1, 8)
        w1t = jnp.zeros((hidden, self.cin_p), jnp.float32)
        w1t = w1t.at[:, :inp].set(w1_eff.T)
        w1t = w1t.at[:, inp].set(b1_eff)          # mask column carries BN1 bias
        self.w1t_aug = w1t.astype(mxu_dtype)

        # depthwise taps, BN2 scale folded: kdwt[c, di*3+dj] = wd[c,0,di,dj]*s2
        self.kdwt_eff = (self.wd[:, 0].reshape(hidden, 9)
                         * self.scale2[:, None]).astype(jnp.float32)
        self.b2col = self.bias2.reshape(hidden, 1).astype(jnp.float32)

        self.w3t_eff = w3_eff.T.astype(mxu_dtype)                # [oup, hidden]
        self.b3col = b3_eff.reshape(oup, 1).astype(jnp.float32)

    # NCHW in -> NCHW out (channel-major is the kernel's native layout, so no
    # transposes are needed at either boundary).
    def __call__(self, x_nchw):
        n, c, h, w = x_nchw.shape
        assert c == self.inp
        x = x_nchw.astype(jnp.float32)
        # zero-pad spatially by 1, append the interior mask channel, pad C to 8k
        xp = jnp.pad(x, ((0, 0), (0, 0), (1, 1), (1, 1)))
        mask = jnp.zeros((n, 1, h + 2, w + 2), jnp.float32)
        mask = mask.at[:, :, 1:h + 1, 1:w + 1].set(1.0)
        xa = jnp.concatenate([xp, mask], axis=1)
        if self.cin_p > self.inp + 1:
            xa = jnp.pad(xa, ((0, 0), (0, self.cin_p - self.inp - 1),
                              (0, 0), (0, 0)))

        if self.stride == 1:
            wk = w + 2                                # flat stride per image row
            r_slab = _round_up(h * wk, 128)           # lane-dense output length
            r_tot = _round_up(2 * wk + 2 + r_slab, 128)
            x2d = xa.reshape(n, self.cin_p, (h + 2) * wk)
            x2d = jnp.pad(x2d, ((0, 0), (0, 0), (0, r_tot - (h + 2) * wk)))
            taps = [di * wk + dj for di in range(3) for dj in range(3)]
            out_flat = _call_block(
                x2d, self.w1t_aug, self.kdwt_eff, self.b2col, self.w3t_eff,
                self.b3col, oup=self.oup, r_slab=r_slab, tap_offsets=taps,
                cin=self.inp, res_offset=wk + 1,
                use_res=self.use_res_connect, mxu_dtype=self.mxu_dtype)
            out = out_flat[:, :, :h * wk].reshape(n, self.oup, h, wk)
            return out[:, :, :, :w]
        else:
            assert h % 2 == 0 and w % 2 == 0
            ho, wo = h // 2, w // 2
            wq = wo + 1                               # flat stride per plane row
            r_slab = _round_up(ho * wq, 128)
            rq = _round_up(max((ho + 1) * wq, wq + 1 + r_slab), 128)
            # 4 even/odd row/col planes -> every stride-2 tap becomes a
            # contiguous lane slice of the expanded planes.
            planes = []
            for pa in range(2):
                for pb in range(2):
                    p = xa[:, :, pa::2, pb::2].reshape(n, self.cin_p,
                                                       (ho + 1) * wq)
                    planes.append(jnp.pad(
                        p, ((0, 0), (0, 0), (0, rq - (ho + 1) * wq))))
            x2d = jnp.concatenate(planes, axis=-1)    # [n, cin_p, 4*rq]
            taps = [((di % 2) * 2 + (dj % 2)) * rq + (di // 2) * wq + (dj // 2)
                    for di in range(3) for dj in range(3)]
            out_flat = _call_block(
                x2d, self.w1t_aug, self.kdwt_eff, self.b2col, self.w3t_eff,
                self.b3col, oup=self.oup, r_slab=r_slab, tap_offsets=taps,
                cin=self.inp, res_offset=0, use_res=False,
                mxu_dtype=self.mxu_dtype)
            out = out_flat[:, :, :ho * wq].reshape(n, self.oup, ho, wq)
            return out[:, :, :, :wo]


# ------------------------- pure-JAX reference check ------------------------ #

def reference_forward(mod, x):
    dn = ("NCHW", "OIHW", "NCHW")
    prec = lax.Precision.HIGHEST
    y = lax.conv_general_dilated(x, mod.w1, (1, 1), "VALID",
                                 dimension_numbers=dn, feature_group_count=2,
                                 precision=prec)
    y = y * mod.scale1[None, :, None, None] + mod.bias1[None, :, None, None]
    y = y[:, mod.perm1]
    y = lax.conv_general_dilated(y, mod.wd, (mod.stride, mod.stride),
                                 ((1, 1), (1, 1)), dimension_numbers=dn,
                                 feature_group_count=mod.hidden, precision=prec)
    y = y * mod.scale2[None, :, None, None] + mod.bias2[None, :, None, None]
    y = jnp.clip(y, 0.0, 6.0)
    y = lax.conv_general_dilated(y, mod.w3, (1, 1), "VALID",
                                 dimension_numbers=dn, feature_group_count=2,
                                 precision=prec)
    y = y * mod.scale3[None, :, None, None] + mod.bias3[None, :, None, None]
    y = y[:, mod.perm2]
    if mod.use_res_connect:
        y = x + y
    return y


if __name__ == "__main__":
    key = jax.random.PRNGKey(0)
    kx1, kp1, kx2, kp2 = jax.random.split(key, 4)

    # Tolerance is set for bf16 MXU operands (f32 accumulation); the pure-JAX
    # reference runs entirely in f32 at HIGHEST precision.
    TOL = 2e-2

    # ---- config 1: stride=1, inp==oup -> residual path ----
    N, inp, H, W = 2, 8, 16, 16
    oup, stride, expand_ratio = 8, 1, 2
    mod1 = InvertedResidualPallas(inp, oup, stride, expand_ratio, kp1)
    x1 = jax.random.normal(kx1, (N, inp, H, W), jnp.float32)
    out1 = jax.block_until_ready(jax.jit(lambda xx: mod1(xx))(x1))
    ref1 = reference_forward(mod1, x1)
    assert out1.shape == (N, oup, H, W), out1.shape
    err1 = float(jnp.max(jnp.abs(out1 - ref1)))
    assert err1 < TOL, f"stride-1 max abs err {err1}"

    # ---- config 2: stride=2, inp!=oup -> no residual, strided dwconv ----
    oup2, stride2 = 16, 2
    mod2 = InvertedResidualPallas(inp, oup2, stride2, expand_ratio, kp2)
    x2 = jax.random.normal(kx2, (N, inp, H, W), jnp.float32)
    out2 = jax.block_until_ready(jax.jit(lambda xx: mod2(xx))(x2))
    ref2 = reference_forward(mod2, x2)
    assert out2.shape == (N, oup2, H // 2, W // 2), out2.shape
    err2 = float(jnp.max(jnp.abs(out2 - ref2)))
    assert err2 < TOL, f"stride-2 max abs err {err2}"

    print("KERNEL_OK")
</pallas_src>

<mosaic_0001>
module attributes {stable_mosaic.version = 11 : i64} {
  func.func @_igcv3_block_kernel(%arg0: i32, %arg1: memref<1x16x512xf32, #tpu.memory_space<vmem>>, %arg2: memref<16x16xbf16, #tpu.memory_space<vmem>>, %arg3: memref<16x9xf32, #tpu.memory_space<vmem>>, %arg4: memref<16x1xf32, #tpu.memory_space<vmem>>, %arg5: memref<8x16xbf16, #tpu.memory_space<vmem>>, %arg6: memref<8x1xf32, #tpu.memory_space<vmem>>, %arg7: memref<1x8x384xf32, #tpu.memory_space<vmem>>, %arg8: memref<16x512xf32, #tpu.memory_space<vmem>>) attributes {dimension_semantics = [#tpu.dimension_semantics<parallel>], iteration_bounds = array<i64: 2>, scalar_prefetch = 0 : i64, scratch_operands = 1 : i64, tpu.core_type = #tpu.core_type<tc>, window_params = [{transform_indices = @transform_0, window_bounds = array<i64: 1, 16, 512>}, {pipeline_mode = #tpu.pipeline_mode<synchronous>, transform_indices = @transform_1, window_bounds = array<i64: 16, 16>}, {pipeline_mode = #tpu.pipeline_mode<synchronous>, transform_indices = @transform_2, window_bounds = array<i64: 16, 9>}, {pipeline_mode = #tpu.pipeline_mode<synchronous>, transform_indices = @transform_3, window_bounds = array<i64: 16, 1>}, {pipeline_mode = #tpu.pipeline_mode<synchronous>, transform_indices = @transform_4, window_bounds = array<i64: 8, 16>}, {pipeline_mode = #tpu.pipeline_mode<synchronous>, transform_indices = @transform_5, window_bounds = array<i64: 8, 1>}, {transform_indices = @transform_6, window_bounds = array<i64: 1, 8, 384>}]} {
    %c0 = arith.constant 0 : index
    %c0_0 = arith.constant 0 : index
    %c0_1 = arith.constant 0 : index
    %0 = vector.load %arg1[%c0, %c0_0, %c0_1] : memref<1x16x512xf32, #tpu.memory_space<vmem>>, vector<1x16x512xf32>
    %1 = vector.shape_cast %0 : vector<1x16x512xf32> to vector<16x512xf32>
    %2 = arith.truncf %1 : vector<16x512xf32> to vector<16x512xbf16>
    %c0_2 = arith.constant 0 : index
    %c0_3 = arith.constant 0 : index
    %3 = vector.load %arg2[%c0_2, %c0_3] : memref<16x16xbf16, #tpu.memory_space<vmem>>, vector<16x16xbf16>
    %cst = arith.constant dense<0.000000e+00> : vector<16x512xf32>
    %4 = tpu.matmul %3, %2, %cst {dimension_numbers = #tpu.dot_dimension_numbers<[1], [0], [0], [1], [0, 0, 1, 1], [], []>} : vector<16x16xbf16>, vector<16x512xbf16>, vector<16x512xf32> -> vector<16x512xf32>
    %c0_4 = arith.constant 0 : index
    %c0_5 = arith.constant 0 : index
    %5 = vector.load %arg8[%c0_4, %c0_5] : memref<16x512xf32, #tpu.memory_space<vmem>>, vector<16x512xf32>
    tpu.vector_store %arg8[%c0_4, %c0_5], %4 {strides = array<i32>} : memref<16x512xf32, #tpu.memory_space<vmem>>, vector<16x512xf32>,
    %c0_6 = arith.constant 0 : index
    %c0_7 = arith.constant 0 : index
    %6 = vector.load %arg3[%c0_6, %c0_7] : memref<16x9xf32, #tpu.memory_space<vmem>>, vector<16x9xf32>
    %c0_8 = arith.constant 0 : index
    %c0_9 = arith.constant 0 : index
    %7 = vector.load %arg8[%c0_8, %c0_9] : memref<16x512xf32, #tpu.memory_space<vmem>>, vector<16x384xf32>
    %8 = vector.extract_strided_slice %6 {offsets = [0, 0], sizes = [16, 1], strides = [1, 1]} : vector<16x9xf32> to vector<16x1xf32>
    %9 = vector.broadcast %8 : vector<16x1xf32> to vector<16x384xf32>
    %10 = arith.mulf %7, %9 : vector<16x384xf32>
    %c0_10 = arith.constant 0 : index
    %c1 = arith.constant 1 : index
    %11 = vector.load %arg8[%c0_10, %c1] : memref<16x512xf32, #tpu.memory_space<vmem>>, vector<16x384xf32>
    %12 = vector.extract_strided_slice %6 {offsets = [0, 1], sizes = [16, 1], strides = [1, 1]} : vector<16x9xf32> to vector<16x1xf32>
    %13 = vector.broadcast %12 : vector<16x1xf32> to vector<16x384xf32>
    %14 = arith.mulf %11, %13 : vector<16x384xf32>
    %15 = arith.addf %10, %14 : vector<16x384xf32>
    %c0_11 = arith.constant 0 : index
    %c2 = arith.constant 2 : index
    %16 = vector.load %arg8[%c0_11, %c2] : memref<16x512xf32, #tpu.memory_space<vmem>>, vector<16x384xf32>
    %17 = vector.extract_strided_slice %6 {offsets = [0, 2], sizes = [16, 1], strides = [1, 1]} : vector<16x9xf32> to vector<16x1xf32>
    %18 = vector.broadcast %17 : vector<16x1xf32> to vector<16x384xf32>
    %19 = arith.mulf %16, %18 : vector<16x384xf32>
    %20 = arith.addf %15, %19 : vector<16x384xf32>
    %c0_12 = arith.constant 0 : index
    %c18 = arith.constant 18 : index
    %21 = vector.load %arg8[%c0_12, %c18] : memref<16x512xf32, #tpu.memory_space<vmem>>, vector<16x384xf32>
    %22 = vector.extract_strided_slice %6 {offsets = [0, 3], sizes = [16, 1], strides = [1, 1]} : vector<16x9xf32> to vector<16x1xf32>
    %23 = vector.broadcast %22 : vector<16x1xf32> to vector<16x384xf32>
    %24 = arith.mulf %21, %23 : vector<16x384xf32>
    %25 = arith.addf %20, %24 : vector<16x384xf32>
    %c0_13 = arith.constant 0 : index
    %c19 = arith.constant 19 : index
    %26 = vector.load %arg8[%c0_13, %c19] : memref<16x512xf32, #tpu.memory_space<vmem>>, vector<16x384xf32>
    %27 = vector.extract_strided_slice %6 {offsets = [0, 4], sizes = [16, 1], strides = [1, 1]} : vector<16x9xf32> to vector<16x1xf32>
    %28 = vector.broadcast %27 : vector<16x1xf32> to vector<16x384xf32>
    %29 = arith.mulf %26, %28 : vector<16x384xf32>
    %30 = arith.addf %25, %29 : vector<16x384xf32>
    %c0_14 = arith.constant 0 : index
    %c20 = arith.constant 20 : index
    %31 = vector.load %arg8[%c0_14, %c20] : memref<16x512xf32, #tpu.memory_space<vmem>>, vector<16x384xf32>
    %32 = vector.extract_strided_slice %6 {offsets = [0, 5], sizes = [16, 1], strides = [1, 1]} : vector<16x9xf32> to vector<16x1xf32>
    %33 = vector.broadcast %32 : vector<16x1xf32> to vector<16x384xf32>
    %34 = arith.mulf %31, %33 : vector<16x384xf32>
    %35 = arith.addf %30, %34 : vector<16x384xf32>
    %c0_15 = arith.constant 0 : index
    %c36 = arith.constant 36 : index
    %36 = vector.load %arg8[%c0_15, %c36] : memref<16x512xf32, #tpu.memory_space<vmem>>, vector<16x384xf32>
    %37 = vector.extract_strided_slice %6 {offsets = [0, 6], sizes = [16, 1], strides = [1, 1]} : vector<16x9xf32> to vector<16x1xf32>
    %38 = vector.broadcast %37 : vector<16x1xf32> to vector<16x384xf32>
    %39 = arith.mulf %36, %38 : vector<16x384xf32>
    %40 = arith.addf %35, %39 : vector<16x384xf32>
    %c0_16 = arith.constant 0 : index
    %c37 = arith.constant 37 : index
    %41 = vector.load %arg8[%c0_16, %c37] : memref<16x512xf32, #tpu.memory_space<vmem>>, vector<16x384xf32>
    %42 = vector.extract_strided_slice %6 {offsets = [0, 7], sizes = [16, 1], strides = [1, 1]} : vector<16x9xf32> to vector<16x1xf32>
    %43 = vector.broadcast %42 : vector<16x1xf32> to vector<16x384xf32>
    %44 = arith.mulf %41, %43 : vector<16x384xf32>
    %45 = arith.addf %40, %44 : vector<16x384xf32>
    %c0_17 = arith.constant 0 : index
    %c38 = arith.constant 38 : index
    %46 = vector.load %arg8[%c0_17, %c38] : memref<16x512xf32, #tpu.memory_space<vmem>>, vector<16x384xf32>
    %47 = vector.extract_strided_slice %6 {offsets = [0, 8], sizes = [16, 1], strides = [1, 1]} : vector<16x9xf32> to vector<16x1xf32>
    %48 = vector.broadcast %47 : vector<16x1xf32> to vector<16x384xf32>
    %49 = arith.mulf %46, %48 : vector<16x384xf32>
    %50 = arith.addf %45, %49 : vector<16x384xf32>
    %c0_18 = arith.constant 0 : index
    %c0_19 = arith.constant 0 : index
    %51 = vector.load %arg4[%c0_18, %c0_19] : memref<16x1xf32, #tpu.memory_space<vmem>>, vector<16x1xf32>
    %52 = vector.broadcast %51 : vector<16x1xf32> to vector<16x384xf32>
    %53 = arith.addf %50, %52 : vector<16x384xf32>
    %cst_20 = arith.constant 0.000000e+00 : f32
    %cst_21 = arith.constant 6.000000e+00 : f32
    %54 = vector.broadcast %cst_20 : f32 to vector<16x384xf32>
    %55 = arith.maximumf %54, %53 : vector<16x384xf32>
    %56 = vector.broadcast %cst_21 : f32 to vector<16x384xf32>
    %57 = arith.minimumf %56, %55 : vector<16x384xf32>
    %c0_22 = arith.constant 0 : index
    %c0_23 = arith.constant 0 : index
    %58 = vector.load %arg5[%c0_22, %c0_23] : memref<8x16xbf16, #tpu.memory_space<vmem>>, vector<8x16xbf16>
    %59 = arith.truncf %57 : vector<16x384xf32> to vector<16x384xbf16>
    %cst_24 = arith.constant dense<0.000000e+00> : vector<8x384xf32>
    %60 = tpu.matmul %58, %59, %cst_24 {dimension_numbers = #tpu.dot_dimension_numbers<[1], [0], [0], [1], [0, 0, 1, 1], [], []>} : vector<8x16xbf16>, vector<16x384xbf16>, vector<8x384xf32> -> vector<8x384xf32>
    %c0_25 = arith.constant 0 : index
    %c0_26 = arith.constant 0 : index
    %61 = vector.load %arg6[%c0_25, %c0_26] : memref<8x1xf32, #tpu.memory_space<vmem>>, vector<8x1xf32>
    %62 = vector.broadcast %61 : vector<8x1xf32> to vector<8x384xf32>
    %63 = arith.addf %60, %62 : vector<8x384xf32>
    %c0_27 = arith.constant 0 : index
    %c0_28 = arith.constant 0 : index
    %c19_29 = arith.constant 19 : index
    %64 = vector.load %arg1[%c0_27, %c0_28, %c19_29] : memref<1x16x512xf32, #tpu.memory_space<vmem>>, vector<1x8x384xf32>
    %65 = vector.shape_cast %64 : vector<1x8x384xf32> to vector<8x384xf32>
    %66 = arith.addf %63, %65 : vector<8x384xf32>
    %c0_30 = arith.constant 0 : index
    %c0_31 = arith.constant 0 : index
    %c0_32 = arith.constant 0 : index
    %67 = vector.load %arg7[%c0_30, %c0_31, %c0_32] : memref<1x8x384xf32, #tpu.memory_space<vmem>>, vector<1x8x384xf32>
    %68 = vector.shape_cast %67 : vector<1x8x384xf32> to vector<8x384xf32>
    %69 = vector.shape_cast %66 : vector<8x384xf32> to vector<1x8x384xf32>
    tpu.vector_store %arg7[%c0_30, %c0_31, %c0_32], %69 {strides = array<i32>} : memref<1x8x384xf32, #tpu.memory_space<vmem>>, vector<1x8x384xf32>,
    return
  }
  func.func @transform_0(%arg0: i32) -> (i32, i32, i32) {
    %c0_i32 = arith.constant 0 : i32
    %c0_i32_0 = arith.constant 0 : i32
    %c0_i32_1 = arith.constant 0 : i32
    return %arg0, %c0_i32, %c0_i32_0 : i32, i32, i32
  }
  func.func @transform_1(%arg0: i32) -> (i32, i32) {
    %c0_i32 = arith.constant 0 : i32
    %c0_i32_0 = arith.constant 0 : i32
    %c0_i32_1 = arith.constant 0 : i32
    return %c0_i32, %c0_i32_0 : i32, i32
  }
  func.func @transform_2(%arg0: i32) -> (i32, i32) {
    %c0_i32 = arith.constant 0 : i32
    %c0_i32_0 = arith.constant 0 : i32
    %c0_i32_1 = arith.constant 0 : i32
    return %c0_i32, %c0_i32_0 : i32, i32
  }
  func.func @transform_3(%arg0: i32) -> (i32, i32) {
    %c0_i32 = arith.constant 0 : i32
    %c0_i32_0 = arith.constant 0 : i32
    %c0_i32_1 = arith.constant 0 : i32
    return %c0_i32, %c0_i32_0 : i32, i32
  }
  func.func @transform_4(%arg0: i32) -> (i32, i32) {
    %c0_i32 = arith.constant 0 : i32
    %c0_i32_0 = arith.constant 0 : i32
    %c0_i32_1 = arith.constant 0 : i32
    return %c0_i32, %c0_i32_0 : i32, i32
  }
  func.func @transform_5(%arg0: i32) -> (i32, i32) {
    %c0_i32 = arith.constant 0 : i32
    %c0_i32_0 = arith.constant 0 : i32
    %c0_i32_1 = arith.constant 0 : i32
    return %c0_i32, %c0_i32_0 : i32, i32
  }
  func.func @transform_6(%arg0: i32) -> (i32, i32, i32) {
    %c0_i32 = arith.constant 0 : i32
    %c0_i32_0 = arith.constant 0 : i32
    %c0_i32_1 = arith.constant 0 : i32
    return %arg0, %c0_i32, %c0_i32_0 : i32, i32, i32
  }
}

</mosaic_0001>

<bundles_post_ra>
// kernel: _lambda_.1
= control target key start
LH: loop header
LB: loop body
LE: loop exit
PB: predicated region body
PF: predicated region fallthrough
CT: control target
= control target key end

     0   :  { %s1210_s21 = smov 0   ;;  %s1667_s0 = inlined_call_operand.vmem [shape: f32[2,16,512], index: 0, kind: input, shape index: {}]   ;;  %s1668_s1 = inlined_call_operand.vmem [shape: bf16[16,16], index: 1, kind: input, shape index: {}]   ;;  %s1669_s2 = inlined_call_operand.vmem [shape: f32[16,9], index: 2, kind: input, shape index: {}]   ;;  %s1670_s3 = inlined_call_operand.vmem [shape: f32[16,1], index: 3, kind: input, shape index: {}]   ;;  %s1671_s4 = inlined_call_operand.vmem [shape: bf16[8,16], index: 4, kind: input, shape index: {}]   ;;  %s1672_s5 = inlined_call_operand.vmem [shape: f32[8,1], index: 5, kind: input, shape index: {}]   ;;  %s1673_s6 = inlined_call_operand.vmem [shape: f32[2,8,384], index: 6, kind: output, shape index: {}]  }
   0x1 LB: > { %s1081_s22 = sadd.s32 4294967295, %s1154_s21   ;;  %p1085_p0 = scmp.ge.s32.totalorder %s1154_s21, 1  ;;  %s1154_s21 = sphi %s1210_s21, %s16_s21  }
   0x2   : > { %p212_p1 = scmp.lt.s32.totalorder %s1154_s21, 3 }
   0x4   : > { %p213_p2 = pnand %p1085_p0, %p212_p1 }
   0x5   : > { %p242_p3 = scmp.lt.s32.totalorder (!%p213_p2), %s1081_s22, 1  ;;  %v1156_v0 = vmov (!%p213_p2), 0   ;;  %v1223_v1 = vld [vmem:[%s1669_s2] sm:$0xff] (!%p213_p2)  ;;  %v1157_v2 = vmov (!%p213_p2), 2   ;;  %v1158_v3 = vmov (!%p213_p2), 1   ;;  %v371_v4 = vld [vmem:[%s1669_s2 + $0x8] sm:$0xff] (!%p213_p2) }
   0x6   : > { %216 = sbr.rel (%p213_p2) target bundleno = 709 (0x2c5), region = 44  ;;  %308 = vmatprep.mubr.bf16.mxu0 (!%p213_p2), %v1156_v0  ;;  %351 = vmatprep.mubr.bf16.mxu1 (!%p213_p2), %v1156_v0  ;;  %v1147_v17 = vld [vmem:[%s1668_s1] sm:$0xff] (!%p213_p2)   ;;  %vm272_vm0 = vcmask (!%p213_p2), 130048   ;;  %v1159_v18 = vmov (!%p213_p2), 3   ;;  %v1160_v19 = vmov (!%p213_p2), 4   ;;  %v1161_v20 = vmov (!%p213_p2), 5  }
   0x7   : > { %1134 = vset.pattern.permute.xlu1 (!%p213_p2), %v1157_v2  ;;  %1133 = vset.pattern.permute.xlu0 (!%p213_p2), %v1158_v3  ;;  %v1162_v21 = vmov (!%p213_p2), 6   ;;  %v1163_v22 = vmov (!%p213_p2), 7   ;;  %v875_v23 = vld [vmem:[%s1670_s3 + $0x8] sm:$0xff] (!%p213_p2)  ;;  %v1164_v24 = vmov (!%p213_p2), 8   ;;  %v874_v25 = vld [vmem:[%s1670_s3] sm:$0xff] (!%p213_p2)  ;;  %s1165_s13 = smov (!%p213_p2), 127  }
   0x8   : > { %462 = vperm.xlu1 (!%p213_p2), %1134, %v1223_v1   ;;  %403 = vperm.xlu0 (!%p213_p2), %1133, %v1223_v1   ;;  %s1166_s14 = smov (!%p213_p2), 126   ;;  %s1167_s15 = smov (!%p213_p2), 110   ;;  %vm1174_vm1 = vmmov (!%p213_p2), 0   ;;  %vm442_vm2 = vcmask (!%p213_p2), 1039360   ;;  %vm501_vm3 = vcmask (!%p213_p2), 1031168   ;;  %vm560_vm4 = vcmask (!%p213_p2), 900096  }
   0x9   : > { %s1168_s16 = smov (!%p213_p2), 109   ;;  %s1169_s17 = smov (!%p213_p2), 108   ;;  %vm619_vm5 = vcmask (!%p213_p2), 891904   ;;  %vm678_vm6 = vcmask (!%p213_p2), 883712   ;;  %vm737_vm7 = vcmask (!%p213_p2), 752640   ;;  %vm796_vm8 = vcmask (!%p213_p2), 744448  }
   0xa   : > { %s1170_s18 = smov (!%p213_p2), 92   ;;  %s1171_s19 = smov (!%p213_p2), 91   ;;  %vm855_vm9 = vcmask (!%p213_p2), 736256  }
   0xb   : > { %s1172_s20 = smov (!%p213_p2), 90  }
   0xc   : > { %466 = vperm.xlu1 (!%p213_p2), %1134, %v371_v4   ;;  %407 = vperm.xlu0 (!%p213_p2), %1133, %v371_v4  }
   0xd   : > { %s1675_s22 = smov (!%p242_p3, %s1081_s22), 1 }
   0xe   : > { %s1096_s25 = sshll.u32 %s1675_s22, 6  ;;  %s1105_s27 = smul.u32 24, %s1675_s22 }
   0xf   : > { %s246_s30 = scalar_lea.vmem %s1667_s0, %s1096_s25 }
  0x10   : > { %v1236_v5 = vld [vmem:[%s246_s30 + $0x8] sm:$0xff]  ;;  %v1238_v7 = vld [vmem:[%s246_s30 + $0x18] sm:$0xff]  ;;  %v1241_v10 = vld [vmem:[%s246_s30] sm:$0xff]  ;;  %1136 = vset.pattern.permute.xlu1 %v1159_v18  ;;  %1135 = vset.pattern.permute.xlu0 %v1159_v18 }
  0x11   : > { %v258_v6 = vld [vmem:[%s246_s30 + $0x28] sm:$0xff]  ;;  %v260_v9 = vld [vmem:[%s246_s30 + $0x38] sm:$0xff]  ;;  %v257_v11 = vld [vmem:[%s246_s30 + $0x20] sm:$0xff]  ;;  %525 = vperm.xlu1 %1136, %v371_v4   ;;  %521 = vperm.xlu0 %1135, %v1223_v1  }
  0x12   : > { %v262_v8 = vpack.c.bf16 %v258_v6, %v1236_v5  ;;  %v264_v12 = vpack.c.bf16 %v260_v9, %v1238_v7  ;;  %v261_v13 = vpack.c.bf16 %v257_v11, %v1241_v10  ;;  %v1245_v14 = vld [vmem:[%s246_s30 + $0x10] sm:$0xff] }
  0x13   : > { %v259_v15 = vld [vmem:[%s246_s30 + $0x30] sm:$0xff]  ;;  %s251_s30 = scalar_lea.vmem %s1673_s6, %s1105_s27 }
  0x14   : > { %276 = vmatprep.subr.bf16.mxu0 %v262_v8  ;;  %v263_v16 = vpack.c.bf16 %v259_v15, %v1245_v14  ;;  %319 = vmatprep.subr.bf16.mxu1 %v264_v12 }
  0x15   : > { %277 = vmatpush1.bf16.msra.mxu0 %v261_v13  ;;  %1137 = vset.pattern.permute.xlu1 %v1160_v19 }
  0x16   : > { %320 = vmatpush1.bf16.msra.mxu1 %v263_v16  ;;  %580 = vperm.xlu1 %1137, %v1223_v1  }
  0x17   : > { %1138 = vset.pattern.permute.xlu0 %v1160_v19 }
  0x18   : > { %1090 = vmatmul.mubr.msk.bf16.vlgmr.msra.gmra.mrb[0].mxu0 %vm272_vm0, %v1147_v17  ;;  %584 = vperm.xlu0 %1138, %v371_v4  }
  0x19   : > { %1091 = vmatmul.mubr.msk.bf16.vlgmr.msra.gmra.mrb[0].mxu1 %vm272_vm0, %v1147_v17  ;;  %949 = vmatprep.mubr.bf16.mxu0 %v1156_v0 }
  0x1a   : > { %1139 = vset.pattern.permute.xlu1 %v1161_v20 }
  0x1b   : > { %639 = vperm.xlu1 %1139, %v1223_v1  }
  0x1c   : > { %1140 = vset.pattern.permute.xlu0 %v1162_v21 }
  0x1d   : > { %698 = vperm.xlu0 %1140, %v1223_v1  }
  0x1f   : > { %643 = vperm.xlu1 %1139, %v371_v4  }
  0x21   : > { %1143 = vset.pattern.permute.xlu0 %v1163_v22 }
  0x22   : > { %761 = vperm.xlu0 %1143, %v371_v4  }
  0x23   : > { %1141 = vset.pattern.permute.xlu1 %v1162_v21 }
  0x24   : > { %702 = vperm.xlu1 %1141, %v371_v4  }
  0x26   : > { %1145 = vset.pattern.permute.xlu0 %v1156_v0 }
  0x27   : > { %380 = vperm.xlu0 %1145, %v1223_v1  }
  0x28   : > { %1142 = vset.pattern.permute.xlu1 %v1163_v22 }
  0x29   : > { %757 = vperm.xlu1 %1142, %v1223_v1  }
  0x2b   : > { %883 = vperm.xlu0 %1145, %v875_v23  }
  0x2d   : > { %1144 = vset.pattern.permute.xlu1 %v1164_v24 }
  0x2e   : > { %816 = vperm.xlu1 %1144, %v1223_v1  }
  0x32   : > { %820 = vperm.xlu1 %1144, %v371_v4  }
  0x36   : > { %1146 = vset.pattern.permute.xlu1 %v1156_v0 }
  0x37   : > { %385 = vperm.xlu1 %1146, %v371_v4  }
  0x3b   : > { %878 = vperm.xlu1 %1146, %v874_v25  }
  0x87   : > { %v1269_v26 = vpop.permute.xlu1 %462  ;;  %v1277_v30 = vpop.permute.xlu0 %403 }
  0x8b   : > { %v1271_v27 = vpop.permute.xlu1 %466  ;;  %v1281_v32 = vpop.permute.xlu0 %407 }
  0x90   : > { %v1273_v28 = vpop.permute.xlu1 %525  ;;  %v1285_v34 = vpop.permute.xlu0 %521 }
  0x95   : > { %v1275_v29 = vpop.permute.xlu1 %580 }
  0x97   : > { %v1289_v36 = vpop.permute.xlu0 %584 }
  0x9a   : > { %v1279_v31 = vpop.permute.xlu1 %639 }
  0x9c   : > { %v1293_v38 = vpop.permute.xlu0 %698 }
  0x9e   : > { %v1283_v33 = vpop.permute.xlu1 %643 }
  0xa1   : > { %v1316_v52 = vpop.permute.xlu0 %761 }
  0xa3   : > { %v1287_v35 = vpop.permute.xlu1 %702 }
  0xa6   : > { %v381_v57 = vpop.permute.xlu0 %380 }
  0xa8   : > { %v1291_v37 = vpop.permute.xlu1 %757 }
  0xad   : > { %v1295_v39 = vpop.permute.xlu1 %816 }
  0xb1   : > { %v1318_v53 = vpop.permute.xlu1 %820 }
  0xb6   : > { %v386_v58 = vpop.permute.xlu1 %385 }
  0xeb   : > { %v310_v40 = vpop.f32.mrb[0].mxu0 }
  0xec   : > { %v353_v41 = vpop.f32.mrb[0].mxu1  ;;  %v1297_v42 = vpop.f32.mrb[1].mxu0  ;;  %v410_v43 = vmul.f32 %v1277_v30, %v310_v40  ;;  %v469_v50 = vmul.f32 %v1269_v26, %v310_v40  ;;  %v528_v54 = vmul.f32 %v1285_v34, %v310_v40  ;;  %v587_v56 = vmul.f32 %v1275_v29, %v310_v40 }
  0xed   : > { %v1300_v44 = vpop.f32.mrb[1].mxu1  ;;  %v1302_v45 = vpop.f32.mrb[2].mxu0  ;;  %v412_v46 = vmul.f32 %v1277_v30, %v353_v41  ;;  %v471_v51 = vmul.f32 %v1269_v26, %v353_v41  ;;  %v530_v55 = vmul.f32 %v1285_v34, %v353_v41  ;;  %v589_v59 = vmul.f32 %v1275_v29, %v353_v41 }
  0xee   : > { %v1305_v47 = vpop.f32.mrb[2].mxu1  ;;  %426 = vrot.lane.b32.xlu1 %v410_v43, %s1165_s13  ;;  %v1308_v48 = vpop.f32.mrb[3].mxu0  ;;  %v646_v60 = vmul.f32 %v1279_v31, %v310_v40  ;;  %v1330_v61 = vmul.f32 %v381_v57, %v310_v40  ;;  %v1333_v62 = vmul.f32 %v381_v57, %v1297_v42  ;;  %v1335_v63 = vmul.f32 %v381_v57, %v353_v41 }
  0xef   : > { %430 = vrot.lane.b32.xlu0 %v412_v46, %s1165_s13  ;;  %v1311_v49 = vpop.f32.mrb[3].mxu1  ;;  %v1338_v0 = vmul.f32 %v386_v58, %v1302_v45  ;;  %v648_v1 = vmul.f32 %v1279_v31, %v353_v41  ;;  %v1342_v2 = vmul.f32 %v386_v58, %v1308_v48  ;;  %v1345_v3 = vmul.f32 %v386_v58, %v1305_v47 }
  0xf0   : > { %v705_v4 = vmul.f32 %v1293_v38, %v310_v40  ;;  %v707_v6 = vmul.f32 %v1293_v38, %v353_v41  ;;  %v764_v8 = vmul.f32 %v1291_v37, %v310_v40  ;;  %v766_v9 = vmul.f32 %v1291_v37, %v353_v41 }
  0xf1   : > { %v823_v11 = vmul.f32 %v1295_v39, %v310_v40  ;;  %v825_v12 = vmul.f32 %v1295_v39, %v353_v41  ;;  %v411_v13 = vmul.f32 %v1277_v30, %v1297_v42  ;;  %v416_v15 = vmul.f32 %v1281_v32, %v1305_v47 }
  0xf2   : > { %485 = vrot.lane.b32.xlu1 %v469_v50, %s1166_s14  ;;  %v413_v16 = vmul.f32 %v1277_v30, %v1300_v44  ;;  %v414_v17 = vmul.f32 %v1281_v32, %v1302_v45  ;;  %v470_v18 = vmul.f32 %v1269_v26, %v1297_v42  ;;  %v475_v19 = vmul.f32 %v1271_v27, %v1305_v47 }
  0xf3   : > { %489 = vrot.lane.b32.xlu0 %v471_v51, %s1166_s14  ;;  %v472_v20 = vmul.f32 %v1269_v26, %v1300_v44  ;;  %v473_v21 = vmul.f32 %v1271_v27, %v1302_v45  ;;  %v529_v22 = vmul.f32 %v1285_v34, %v1297_v42  ;;  %v534_v23 = vmul.f32 %v1273_v28, %v1305_v47 }
  0xf4   : > { %v531_v24 = vmul.f32 %v1285_v34, %v1300_v44  ;;  %v532_v25 = vmul.f32 %v1273_v28, %v1302_v45  ;;  %v588_v26 = vmul.f32 %v1275_v29, %v1297_v42  ;;  %v593_v30 = vmul.f32 %v1289_v36, %v1305_v47 }
  0xf5   : > { %v590_v34 = vmul.f32 %v1275_v29, %v1300_v44  ;;  %v591_v40 = vmul.f32 %v1289_v36, %v1302_v45  ;;  %v647_v41 = vmul.f32 %v1279_v31, %v1297_v42  ;;  %v652_v43 = vmul.f32 %v1283_v33, %v1305_v47 }
  0xf6   : > { %544 = vrot.lane.b32.xlu1 %v528_v54, %s1167_s15  ;;  %v649_v29 = vmul.f32 %v1279_v31, %v1300_v44  ;;  %v650_v46 = vmul.f32 %v1283_v33, %v1302_v45  ;;  %v706_v50 = vmul.f32 %v1293_v38, %v1297_v42  ;;  %v711_v51 = vmul.f32 %v1287_v35, %v1305_v47 }
  0xf7   : > { %548 = vrot.lane.b32.xlu0 %v530_v55, %s1167_s15  ;;  %v708_v31 = vmul.f32 %v1293_v38, %v1300_v44  ;;  %v709_v54 = vmul.f32 %v1287_v35, %v1302_v45  ;;  %v765_v55 = vmul.f32 %v1291_v37, %v1297_v42  ;;  %v767_v38 = vmul.f32 %v1291_v37, %v1300_v44 }
  0xf8   : > { %v768_v57 = vmul.f32 %v1316_v52, %v1302_v45  ;;  %v824_v58 = vmul.f32 %v1295_v39, %v1297_v42  ;;  %v415_v37 = vmul.f32 %v1281_v32, %v1308_v48  ;;  %v474_v42 = vmul.f32 %v1271_v27, %v1308_v48 }
  0xfa   : > { %603 = vrot.lane.b32.xlu1 %v587_v56, %s1168_s16  ;;  %v770_v56 = vmul.f32 %v1316_v52, %v1305_v47 }
  0xfb   : > { %607 = vrot.lane.b32.xlu0 %v589_v59, %s1168_s16  ;;  %v829_v59 = vmul.f32 %v1318_v53, %v1305_v47  ;;  %v417_v47 = vmul.f32 %v1281_v32, %v1311_v49  ;;  %v535_v32 = vmul.f32 %v1273_v28, %v1311_v49 }
  0xfe   : > { %662 = vrot.lane.b32.xlu1 %v646_v60, %s1169_s17  ;;  %v827_v60 = vmul.f32 %v1318_v53, %v1302_v45  ;;  %v476_v45 = vmul.f32 %v1271_v27, %v1311_v49  ;;  %v594_v27 = vmul.f32 %v1289_v36, %v1311_v49 }
  0xff   : > { %666 = vrot.lane.b32.xlu0 %v648_v1, %s1169_s17  ;;  %v533_v1 = vmul.f32 %v1273_v28, %v1308_v48  ;;  %v1485_v28 = vpop.permute.xlu0 %883 }
 0x102   : > { %721 = vrot.lane.b32.xlu1 %v705_v4, %s1170_s18  ;;  %v592_v4 = vmul.f32 %v1289_v36, %v1308_v48  ;;  %v769_v36 = vmul.f32 %v1316_v52, %v1308_v48 }
 0x103   : > { %725 = vrot.lane.b32.xlu0 %v707_v6, %s1170_s18  ;;  %v651_v6 = vmul.f32 %v1283_v33, %v1308_v48 }
 0x106   : > { %780 = vrot.lane.b32.xlu1 %v764_v8, %s1171_s19  ;;  %v1481_v8 = vpop.permute.xlu1 %878 }
 0x107   : > { %784 = vrot.lane.b32.xlu0 %v766_v9, %s1171_s19  ;;  %v710_v9 = vmul.f32 %v1287_v35, %v1308_v48 }
 0x10a   : > { %839 = vrot.lane.b32.xlu1 %v823_v11, %s1172_s20  ;;  %v653_v11 = vmul.f32 %v1283_v33, %v1311_v49  ;;  %v828_v33 = vmul.f32 %v1318_v53, %v1308_v48  ;;  %v908_v48 = vld [vmem:[%s1672_s5] sm:$0xff] }
 0x10b   : > { %843 = vrot.lane.b32.xlu0 %v825_v12, %s1172_s20 }
 0x10e   : > { %428 = vrot.lane.b32.xlu1 %v411_v13, %s1165_s13 }
 0x10f   : > { %438 = vrot.lane.b32.xlu0 %v416_v15, %s1165_s13  ;;  %v712_v15 = vmul.f32 %v1287_v35, %v1311_v49  ;;  %v826_v35 = vmul.f32 %v1295_v39, %v1300_v44 }
 0x112   : > { %432 = vrot.lane.b32.xlu1 %v413_v16, %s1165_s13 }
 0x113   : > { %434 = vrot.lane.b32.xlu0 %v414_v17, %s1165_s13 }
 0x116   : > { %487 = vrot.lane.b32.xlu1 %v470_v18, %s1166_s14  ;;  %v771_v18 = vmul.f32 %v1316_v52, %v1311_v49 }
 0x117   : > { %497 = vrot.lane.b32.xlu0 %v475_v19, %s1166_s14  ;;  %v1173_v19 = vmov 0.0  }
 0x118   : > { %1099 = vmatprep.subr.bf16.mxu1 %v1173_v19  ;;  %1101 = vmatprep.mubr.msk.bf16.mxu1 %vm1174_vm1, %v1173_v19 }
 0x11a   : > { %491 = vrot.lane.b32.xlu1 %v472_v20, %s1166_s14 }
 0x11b   : > { %493 = vrot.lane.b32.xlu0 %v473_v21, %s1166_s14 }
 0x11e   : > { %546 = vrot.lane.b32.xlu1 %v529_v22, %s1167_s15  ;;  %v830_v22 = vmul.f32 %v1318_v53, %v1311_v49 }
 0x11f   : > { %556 = vrot.lane.b32.xlu0 %v534_v23, %s1167_s15 }
 0x122   : > { %550 = vrot.lane.b32.xlu1 %v531_v24, %s1167_s15 }
 0x123   : > { %552 = vrot.lane.b32.xlu0 %v532_v25, %s1167_s15 }
 0x126   : > { %605 = vrot.lane.b32.xlu1 %v588_v26, %s1168_s16 }
 0x127   : > { %615 = vrot.lane.b32.xlu0 %v593_v30, %s1168_s16 }
 0x12a   : > { %609 = vrot.lane.b32.xlu1 %v590_v34, %s1168_s16 }
 0x12b   : > { %611 = vrot.lane.b32.xlu0 %v591_v40, %s1168_s16 }
 0x12e   : > { %664 = vrot.lane.b32.xlu1 %v647_v41, %s1169_s17 }
 0x12f   : > { %674 = vrot.lane.b32.xlu0 %v652_v43, %s1169_s17 }
 0x132   : > { %668 = vrot.lane.b32.xlu1 %v649_v29, %s1169_s17 }
 0x133   : > { %670 = vrot.lane.b32.xlu0 %v650_v46, %s1169_s17 }
 0x136   : > { %723 = vrot.lane.b32.xlu1 %v706_v50, %s1170_s18 }
 0x137   : > { %733 = vrot.lane.b32.xlu0 %v711_v51, %s1170_s18 }
 0x13a   : > { %727 = vrot.lane.b32.xlu1 %v708_v31, %s1170_s18 }
 0x13b   : > { %729 = vrot.lane.b32.xlu0 %v709_v54, %s1170_s18 }
 0x13e   : > { %782 = vrot.lane.b32.xlu1 %v765_v55, %s1171_s19 }
 0x13f   : > { %792 = vrot.lane.b32.xlu0 %v770_v56, %s1171_s19 }
 0x142   : > { %786 = vrot.lane.b32.xlu1 %v767_v38, %s1171_s19 }
 0x143   : > { %788 = vrot.lane.b32.xlu0 %v768_v57, %s1171_s19 }
 0x146   : > { %841 = vrot.lane.b32.xlu1 %v824_v58, %s1172_s20 }
 0x147   : > { %851 = vrot.lane.b32.xlu0 %v829_v59, %s1172_s20 }
 0x14a   : > { %436 = vrot.lane.b32.xlu1 %v415_v37, %s1165_s13 }
 0x14b   : > { %847 = vrot.lane.b32.xlu0 %v827_v60, %s1172_s20 }
 0x14e   : > { %495 = vrot.lane.b32.xlu1 %v474_v42, %s1166_s14 }
 0x14f   : > { %440 = vrot.lane.b32.xlu0 %v417_v47, %s1165_s13 }
 0x152   : > { %554 = vrot.lane.b32.xlu1 %v533_v1, %s1167_s15 }
 0x153   : > { %499 = vrot.lane.b32.xlu0 %v476_v45, %s1166_s14 }
 0x156   : > { %613 = vrot.lane.b32.xlu1 %v592_v4, %s1168_s16 }
 0x157   : > { %558 = vrot.lane.b32.xlu0 %v535_v32, %s1167_s15 }
 0x15a   : > { %672 = vrot.lane.b32.xlu1 %v651_v6, %s1169_s17 }
 0x15b   : > { %617 = vrot.lane.b32.xlu0 %v594_v27, %s1168_s16 }
 0x15e   : > { %731 = vrot.lane.b32.xlu1 %v710_v9, %s1170_s18 }
 0x15f   : > { %676 = vrot.lane.b32.xlu0 %v653_v11, %s1169_s17 }
 0x160   : > { %v427_v12 = vpop.permute.xlu1 %426 }
 0x161   : > { %v431_v13 = vpop.permute.xlu0 %430 }
 0x162   : > { %790 = vrot.lane.b32.xlu1 %v769_v36, %s1171_s19 }
 0x163   : > { %735 = vrot.lane.b32.xlu0 %v712_v15, %s1170_s18 }
 0x164   : > { %v486_v16 = vpop.permute.xlu1 %485 }
 0x165   : > { %v490_v17 = vpop.permute.xlu0 %489 }
 0x166   : > { %849 = vrot.lane.b32.xlu1 %v828_v33, %s1172_s20 }
 0x167   : > { %794 = vrot.lane.b32.xlu0 %v771_v18, %s1171_s19 }
 0x168   : > { %v545_v20 = vpop.permute.xlu1 %544 }
 0x169   : > { %v549_v21 = vpop.permute.xlu0 %548 }
 0x16a   : > { %845 = vrot.lane.b32.xlu1 %v826_v35, %s1172_s20 }
 0x16b   : > { %853 = vrot.lane.b32.xlu0 %v830_v22, %s1172_s20 }
 0x16c   : > { %v604_v52 = vpop.permute.xlu1 %603 }
 0x16d   : > { %v608_v23 = vpop.permute.xlu0 %607 }
 0x16e   : > { %911 = vperm.xlu1 %1146, %v908_v48  }
 0x16f   : > { %1006 = vrot.lane.b32.xlu0 %v1241_v10, %s1168_s16 }
 0x170   : > { %v663_v39 = vpop.permute.xlu1 %662 }
 0x171   : > { %v1514_v44 = vpop.permute.xlu0 %666 }
 0x172   : > { %1008 = vrot.lane.b32.xlu1 %v1236_v5, %s1168_s16 }
 0x173   : > { %1010 = vrot.lane.b32.xlu0 %v1245_v14, %s1168_s16 }
 0x174   : > { %v1520_v49 = vpop.permute.xlu1 %721 }
 0x175   : > { %v1522_v53 = vpop.permute.xlu0 %725 }
 0x176   : > { %1012 = vrot.lane.b32.xlu1 %v1238_v7, %s1168_s16 }
 0x178   : > { %v1526_v24 = vpop.permute.xlu1 %780 }
 0x179   : > { %v1528_v25 = vpop.permute.xlu0 %784 }
 0x17c   : > { %v1530_v10 = vpop.permute.xlu1 %839 }
 0x17d   : > { %v1532_v26 = vpop.permute.xlu0 %843 }
 0x180   : > { %v429_v5 = vpop.permute.xlu1 %428 }
 0x181   : > { %v1534_v30 = vpop.permute.xlu0 %438  ;;  %v443_v14 = vsel %vm442_vm2, %v427_v12, %v429_v5  ;;  %v444_v34 = vsel %vm442_vm2, %v429_v5, %v431_v13 }
 0x182   : > { %v455_v40 = vadd.f32 %v443_v14, %v1330_v61  ;;  %v456_v7 = vadd.f32 %v444_v34, %v1333_v62 }
 0x184   : > { %v433_v41 = vpop.permute.xlu1 %432 }
 0x185   : > { %v445_v43 = vsel %vm442_vm2, %v431_v13, %v433_v41  ;;  %v1541_v29 = vpop.permute.xlu0 %434 }
 0x186   : > { %v457_v46 = vadd.f32 %v445_v43, %v1335_v63 }
 0x188   : > { %v488_v50 = vpop.permute.xlu1 %487 }
 0x189   : > { %v502_v51 = vsel %vm501_vm3, %v486_v16, %v488_v50  ;;  %v503_v31 = vsel %vm501_vm3, %v488_v50, %v490_v17  ;;  %v1546_v54 = vpop.permute.xlu0 %497 }
 0x18a   : > { %v514_v55 = vadd.f32 %v502_v51, %v455_v40  ;;  %v515_v56 = vadd.f32 %v503_v31, %v456_v7 }
 0x18c   : > { %v492_v61 = vpop.permute.xlu1 %491 }
 0x18d   : > { %v504_v62 = vsel %vm501_vm3, %v490_v17, %v492_v61  ;;  %v1549_v38 = vpop.permute.xlu0 %493 }
 0x18e   : > { %v516_v57 = vadd.f32 %v504_v62, %v457_v46 }
 0x190   : > { %v547_v58 = vpop.permute.xlu1 %546 }
 0x191   : > { %v561_v63 = vsel %vm560_vm4, %v545_v20, %v547_v58  ;;  %v562_v59 = vsel %vm560_vm4, %v547_v58, %v549_v21  ;;  %v1553_v37 = vpop.permute.xlu0 %556 }
 0x192   : > { %v573_v60 = vadd.f32 %v561_v63, %v514_v55  ;;  %v574_v42 = vadd.f32 %v562_v59, %v515_v56 }
 0x194   : > { %v551_v47 = vpop.permute.xlu1 %550 }
 0x195   : > { %v563_v1 = vsel %vm560_vm4, %v549_v21, %v551_v47  ;;  %v1556_v45 = vpop.permute.xlu0 %552 }
 0x196   : > { %v575_v4 = vadd.f32 %v563_v1, %v516_v57 }
 0x198   : > { %v606_v32 = vpop.permute.xlu1 %605 }
 0x199   : > { %v620_v6 = vsel %vm619_vm5, %v604_v52, %v606_v32  ;;  %v621_v27 = vsel %vm619_vm5, %v606_v32, %v608_v23  ;;  %v1560_v9 = vpop.permute.xlu0 %615 }
 0x19a   : > { %v632_v11 = vadd.f32 %v620_v6, %v573_v60  ;;  %v633_v12 = vadd.f32 %v621_v27, %v574_v42 }
 0x19c   : > { %v610_v36 = vpop.permute.xlu1 %609 }
 0x19d   : > { %v622_v13 = vsel %vm619_vm5, %v608_v23, %v610_v36  ;;  %v1563_v15 = vpop.permute.xlu0 %611 }
 0x19e   : > { %v634_v16 = vadd.f32 %v622_v13, %v575_v4 }
 0x1a0   : > { %v665_v33 = vpop.permute.xlu1 %664 }
 0x1a1   : > { %v679_v17 = vsel %vm678_vm6, %v663_v39, %v665_v33  ;;  %v680_v18 = vsel %vm678_vm6, %v665_v33, %v1514_v44  ;;  %v1568_v19 = vpop.permute.xlu0 %674 }
 0x1a2   : > { %v691_v20 = vadd.f32 %v679_v17, %v632_v11  ;;  %v692_v35 = vadd.f32 %v680_v18, %v633_v12 }
 0x1a4   : > { %v669_v21 = vpop.permute.xlu1 %668 }
 0x1a5   : > { %v681_v22 = vsel %vm678_vm6, %v1514_v44, %v669_v21  ;;  %v671_v48 = vpop.permute.xlu0 %670 }
 0x1a6   : > { %v693_v52 = vadd.f32 %v681_v22, %v634_v16 }
 0x1a8   : > { %v724_v23 = vpop.permute.xlu1 %723 }
 0x1a9   : > { %v738_v5 = vsel %vm737_vm7, %v1520_v49, %v724_v23  ;;  %v739_v39 = vsel %vm737_vm7, %v724_v23, %v1522_v53  ;;  %v1576_v14 = vpop.permute.xlu0 %733 }
 0x1aa   : > { %v750_v34 = vadd.f32 %v738_v5, %v691_v20  ;;  %v751_v40 = vadd.f32 %v739_v39, %v692_v35 }
 0x1ac   : > { %v728_v7 = vpop.permute.xlu1 %727 }
 0x1ad   : > { %v740_v41 = vsel %vm737_vm7, %v1522_v53, %v728_v7  ;;  %v730_v43 = vpop.permute.xlu0 %729 }
 0x1ae   : > { %v752_v44 = vadd.f32 %v740_v41, %v693_v52 }
 0x1b0   : > { %v783_v46 = vpop.permute.xlu1 %782 }
 0x1b1   : > { %v797_v50 = vsel %vm796_vm8, %v1526_v24, %v783_v46  ;;  %v798_v49 = vsel %vm796_vm8, %v783_v46, %v1528_v25  ;;  %v1584_v51 = vpop.permute.xlu0 %792 }
 0x1b2   : > { %v809_v31 = vadd.f32 %v797_v50, %v750_v34  ;;  %v810_v55 = vadd.f32 %v798_v49, %v751_v40 }
 0x1b4   : > { %v787_v56 = vpop.permute.xlu1 %786 }
 0x1b5   : > { %v799_v61 = vsel %vm796_vm8, %v1528_v25, %v787_v56  ;;  %v789_v62 = vpop.permute.xlu0 %788 }
 0x1b6   : > { %v1588_v53 = vadd.f32 %v799_v61, %v752_v44 }
 0x1b8   : > { %v842_v57 = vpop.permute.xlu1 %841 }
 0x1b9   : > { %v856_v58 = vsel %vm855_vm9, %v1530_v10, %v842_v57  ;;  %v1592_v24 = vpop.permute.xlu0 %851  ;;  %v857_v23 = vsel %vm855_vm9, %v842_v57, %v1532_v26 }
 0x1ba   : > { %v868_v63 = vadd.f32 %v856_v58, %v809_v31  ;;  %v869_v7 = vadd.f32 %v857_v23, %v810_v55 }
 0x1bc   : > { %v437_v59 = vpop.permute.xlu1 %436  ;;  %v886_v57 = vadd.f32 %v1481_v8, %v868_v63  ;;  %v887_v58 = vadd.f32 %v1481_v8, %v869_v7 }
 0x1bd   : > { %v848_v60 = vpop.permute.xlu0 %847  ;;  %v446_v42 = vsel %vm442_vm2, %v1541_v29, %v437_v59  ;;  %v447_v47 = vsel %vm442_vm2, %v437_v59, %v1534_v30 }
 0x1be   : > { %v458_v25 = vadd.f32 %v446_v42, %v1338_v0  ;;  %v459_v1 = vadd.f32 %v447_v47, %v1342_v2 }
 0x1c0   : > { %v496_v4 = vpop.permute.xlu1 %495 }
 0x1c1   : > { %v441_v32 = vpop.permute.xlu0 %440  ;;  %v505_v10 = vsel %vm501_vm3, %v1549_v38, %v496_v4  ;;  %v506_v6 = vsel %vm501_vm3, %v496_v4, %v1546_v54 }
 0x1c2   : > { %v448_v27 = vsel %vm442_vm2, %v1534_v30, %v441_v32  ;;  %v517_v11 = vadd.f32 %v505_v10, %v458_v25  ;;  %v518_v29 = vadd.f32 %v506_v6, %v459_v1  ;;  %v892_v10 = vmax.f32 %v886_v57, 0.0 }
 0x1c3   : > { %v460_v12 = vadd.f32 %v448_v27, %v1345_v3  ;;  %v893_v27 = vmax.f32 %v887_v58, 0.0 }
 0x1c4   : > { %v555_v36 = vpop.permute.xlu1 %554 }
 0x1c5   : > { %v500_v13 = vpop.permute.xlu0 %499  ;;  %v564_v30 = vsel %vm560_vm4, %v1556_v45, %v555_v36  ;;  %v565_v20 = vsel %vm560_vm4, %v555_v36, %v1553_v37 }
 0x1c6   : > { %v507_v0 = vsel %vm501_vm3, %v1546_v54, %v500_v13  ;;  %v576_v21 = vadd.f32 %v564_v30, %v517_v11  ;;  %v577_v22 = vadd.f32 %v565_v20, %v518_v29 }
 0x1c7   : > { %v519_v2 = vadd.f32 %v507_v0, %v460_v12 }
 0x1c8   : > { %v614_v16 = vpop.permute.xlu1 %613 }
 0x1c9   : > { %v559_v33 = vpop.permute.xlu0 %558  ;;  %v623_v35 = vsel %vm619_vm5, %v1563_v15, %v614_v16  ;;  %v624_v54 = vsel %vm619_vm5, %v614_v16, %v1560_v9  ;;  %v898_v16 = vmin.f32 %v892_v10, 6.0 }
 0x1ca   : > { %v566_v38 = vsel %vm560_vm4, %v1553_v37, %v559_v33  ;;  %v635_v37 = vadd.f32 %v623_v35, %v576_v21  ;;  %v636_v34 = vadd.f32 %v624_v54, %v577_v22 }
 0x1cb   : > { %v578_v17 = vadd.f32 %v566_v38, %v519_v2  ;;  %v899_v38 = vmin.f32 %v893_v27, 6.0 }
 0x1cc   : > { %v673_v18 = vpop.permute.xlu1 %672 }
 0x1cd   : > { %v618_v3 = vpop.permute.xlu0 %617  ;;  %v682_v5 = vsel %vm678_vm6, %v671_v48, %v673_v18  ;;  %v683_v45 = vsel %vm678_vm6, %v673_v18, %v1568_v19 }
 0x1ce   : > { %v625_v41 = vsel %vm619_vm5, %v1560_v9, %v618_v3  ;;  %v694_v44 = vadd.f32 %v682_v5, %v635_v37  ;;  %v695_v46 = vadd.f32 %v683_v45, %v636_v34 }
 0x1cf   : > { %v637_v55 = vadd.f32 %v625_v41, %v578_v17 }
 0x1d0   : > { %v732_v52 = vpop.permute.xlu1 %731 }
 0x1d1   : > { %v677_v39 = vpop.permute.xlu0 %676  ;;  %v741_v40 = vsel %vm737_vm7, %v730_v43, %v732_v52  ;;  %v742_v15 = vsel %vm737_vm7, %v732_v52, %v1576_v14 }
 0x1d2   : > { %v684_v56 = vsel %vm678_vm6, %v1568_v19, %v677_v39  ;;  %v753_v43 = vadd.f32 %v741_v40, %v694_v44  ;;  %v754_v61 = vadd.f32 %v742_v15, %v695_v46 }
 0x1d4   : > { %v791_v50 = vpop.permute.xlu1 %790 }
 0x1d5   : > { %v736_v49 = vpop.permute.xlu0 %735  ;;  %v800_v48 = vsel %vm796_vm8, %v789_v62, %v791_v50  ;;  %v801_v31 = vsel %vm796_vm8, %v791_v50, %v1584_v51  ;;  %v696_v62 = vadd.f32 %v684_v56, %v637_v55 }
 0x1d6   : > { %v743_v9 = vsel %vm737_vm7, %v1576_v14, %v736_v49  ;;  %v812_v59 = vadd.f32 %v800_v48, %v753_v43  ;;  %v813_v42 = vadd.f32 %v801_v31, %v754_v61 }
 0x1d7   : > { %v755_v6 = vadd.f32 %v743_v9, %v696_v62 }
 0x1d8   : > { %v850_v47 = vpop.permute.xlu1 %849 }
 0x1d9   : > { %v795_v25 = vpop.permute.xlu0 %794  ;;  %v859_v1 = vsel %vm855_vm9, %v848_v60, %v850_v47  ;;  %v860_v19 = vsel %vm855_vm9, %v850_v47, %v1592_v24 }
 0x1da   : > { %v802_v4 = vsel %vm796_vm8, %v1584_v51, %v795_v25  ;;  %v871_v63 = vadd.f32 %v859_v1, %v812_v59  ;;  %v872_v32 = vadd.f32 %v860_v19, %v813_v42 }
 0x1db   : > { %v814_v12 = vadd.f32 %v802_v4, %v755_v6 }
 0x1dc   : > { %v889_v14 = vadd.f32 %v1485_v28, %v871_v63  ;;  %v890_v11 = vadd.f32 %v1485_v28, %v872_v32  ;;  %v846_v29 = vpop.permute.xlu1 %845 }
 0x1dd   : > { %v854_v36 = vpop.permute.xlu0 %853  ;;  %v858_v60 = vsel %vm855_vm9, %v1532_v26, %v846_v29 }
 0x1de   : > { %v895_v13 = vmax.f32 %v889_v14, 0.0  ;;  %v896_v0 = vmax.f32 %v890_v11, 0.0  ;;  %v861_v51 = vsel %vm855_vm9, %v1592_v24, %v854_v36  ;;  %v870_v2 = vadd.f32 %v858_v60, %v1588_v53  ;;  %v904_v53 = vld [vmem:[%s1671_s4] sm:$0xf] }
 0x1df   : > { %v873_v33 = vadd.f32 %v861_v51, %v814_v12 }
 0x1e0   : > { %v901_v17 = vmin.f32 %v895_v13, 6.0  ;;  %v902_v18 = vmin.f32 %v896_v0, 6.0  ;;  %v888_v30 = vadd.f32 %v1481_v8, %v870_v2 }
 0x1e1   : > { %v891_v20 = vadd.f32 %v1485_v28, %v873_v33  ;;  %v1007_v28 = vpop.permute.xlu0 %1006 }
 0x1e2   : > { %v894_v3 = vmax.f32 %v888_v30, 0.0  ;;  %v906_v35 = vpack.c.bf16 %v902_v18, %v899_v38  ;;  %v905_v26 = vpack.c.bf16 %v901_v17, %v898_v16 }
 0x1e3   : > { %v897_v54 = vmax.f32 %v891_v20, 0.0 }
 0x1e4   : > { %v900_v21 = vmin.f32 %v894_v3, 6.0  ;;  %917 = vmatprep.subr.bf16.mxu0 %v906_v35 }
 0x1e5   : > { %v903_v22 = vmin.f32 %v897_v54, 6.0  ;;  %918 = vmatpush1.bf16.msra.mxu0 %v905_v26  ;;  %v1011_v45 = vpop.permute.xlu0 %1010 }
 0x1e7   : > { %v907_v24 = vpack.c.bf16 %v903_v22, %v900_v21 }
 0x1e8   : > { %1092 = vmatmul.mubr.msk.bf16.vlgmr.msra.gmra.mrb[4].mxu0 %vm272_vm0, %v904_v53 }
 0x1e9   : > { %1100 = vmatpush3.bf16.msra.mxu1 %v907_v24 }
 0x1ec   : > { %1102 = vmatmul.mubr.msk.bf16.vlgmr.msra.gmra.mrb[4].mxu1 %vm272_vm0, %v904_v53 }
 0x1ed   : > { %v912_v8 = vpop.permute.xlu1 %911 }
 0x1f1   : > { %v1009_v52 = vpop.permute.xlu1 %1008 }
 0x1f2   : > { %v1014_v23 = vsel %vm619_vm5, %v1007_v28, %v1009_v52  ;;  %v1015_v41 = vsel %vm619_vm5, %v1009_v52, %v1011_v45 }
 0x1f5   : > { %v1013_v34 = vpop.permute.xlu1 %1012 }
 0x1f6   : > { %v1016_v49 = vsel %vm619_vm5, %v1011_v45, %v1013_v34 }
 0x2bb   : > { %v951_v5 = vpop.f32.mrb[4].mxu0 }
 0x2bc   : > { %v952_v39 = vadd.f32 %v951_v5, %v912_v8  ;;  %v953_v37 = vpop.f32.mrb[5].mxu0 }
 0x2bd   : > { %v954_v40 = vadd.f32 %v953_v37, %v912_v8  ;;  %v955_v15 = vpop.f32.mrb[6].mxu0 }
 0x2be   : > { %v1020_v7 = vadd.f32 %v1014_v23, %v952_v39  ;;  %v956_v44 = vpop.f32.mrb[7].mxu0 }
 0x2bf   : > { %v1021_v46 = vadd.f32 %v1015_v41, %v954_v40  ;;  %v992_v50 = vpop.f32.mrb[4].mxu1 }
 0x2c0   : > { %1023 = vst [vmem:[%s251_s30] sm:$0xff] %v1020_v7  ;;  %v993_v48 = vadd.f32 %v992_v50, %v912_v8  ;;  %v1103_v31 = vpop.f32.mrb[5].mxu1 }
 0x2c1   : > { %1024 = vst [vmem:[%s251_s30 + $0x8] sm:$0xff] %v1021_v46  ;;  %v995_v56 = vpop.f32.mrb[6].mxu1 }
 0x2c2   : > { %v1022_v43 = vadd.f32 %v1016_v49, %v993_v48  ;;  %v1104_v61 = vpop.f32.mrb[7].mxu1 }
 0x2c4   : > { %1025 = vst [vmem:[%s251_s30 + $0x10] sm:$0xff] %v1022_v43 }
 0x2c5 PF: > { %s16_s21 = sadd.s32 1, %s1154_s21  }
 0x2c6   : > { %p13_p4 = scmp.ge.s32.totalorder %s16_s21, 4  }
 0x2c8   :  { %15 = sbr.rel (!%p13_p4) target bundleno = 1 (0x1), region = 74 }

</bundles_post_ra>
